<compile_context>
chip_gen: v7x
topology: tpu7x:2x2x1
jax: 0.10.0
libtpu: 0.0.40
codegen_flags: <defaults>
</compile_context>

<pallas_src>
import math

import jax
import jax.numpy as jnp
from jax.experimental import pallas as pl
from jax.experimental.pallas import tpu as pltpu


_LANE = 128
_W = 512                        # lane-dense width (multiple of 128)
_NUM_SPLITS = 2                 # leading 'parallel' axis -> both TCs on v7x
_TARGET_TILE_BYTES = 1 << 20    # ~1 MiB f32 per input block (portable across gens)


# ----------------------------------------------------------------------------
# Fused Pallas kernel
# ----------------------------------------------------------------------------
def _rd_loss_kernel(a_ref, b_ref, lik_ref, sq_out_ref, log_out_ref,
                    acc_sq_ref, acc_log_ref):
    """Per grid step: elementwise accumulate (a-b)^2 and log(lik) into tile-shaped
    VMEM scratch; on the last step of the reduction axis, do one full cross-lane
    reduce and broadcast the partial into a lane-dense (1, 8, 128) output block."""
    i = pl.program_id(1)

    @pl.when(i == 0)
    def _():
        acc_sq_ref[...] = jnp.zeros_like(acc_sq_ref)
        acc_log_ref[...] = jnp.zeros_like(acc_log_ref)

    d = a_ref[...].astype(jnp.float32) - b_ref[...].astype(jnp.float32)
    acc_sq_ref[...] += d * d
    acc_log_ref[...] += jnp.log(lik_ref[...].astype(jnp.float32))

    @pl.when(i == pl.num_programs(1) - 1)
    def _():
        sq_out_ref[...] = jnp.full(sq_out_ref.shape, jnp.sum(acc_sq_ref[...]),
                                   dtype=sq_out_ref.dtype)
        log_out_ref[...] = jnp.full(log_out_ref.shape, jnp.sum(acc_log_ref[...]),
                                    dtype=log_out_ref.dtype)


# ----------------------------------------------------------------------------
# Wrapper helpers
# ----------------------------------------------------------------------------
def _round_up(x, m):
    return ((x + m - 1) // m) * m


def _cdiv(a, b):
    return -(-a // b)


def _pad_to_2d(x, pad_value, total_rows):
    """Flatten x, pad with a neutral value, and view as (total_rows, _W)."""
    flat = jnp.ravel(x)
    total = total_rows * _W
    n = flat.shape[0]
    if total > n:
        flat = jnp.pad(flat, (0, total - n), constant_values=pad_value)
    return flat.reshape(total_rows, _W)


def fused_rd_sums(x_hat_F, target_F, lik_flat):
    """Return (sum((x_hat - target)^2), sum(log(lik))) from one pallas_call."""
    la = x_hat_F.size
    lb = lik_flat.size

    rows_a = max(1, _cdiv(la, _W))
    rows_b = max(1, _cdiv(lb, _W))

    # Rows per tile targeting ~1 MiB of f32 per input block.
    tr_target = max(16, _TARGET_TILE_BYTES // (_W * 4))
    grid_k = max(1,
                 _cdiv(rows_a, _NUM_SPLITS * tr_target),
                 _cdiv(rows_b, _NUM_SPLITS * tr_target))

    # Per-array tile rows (multiple of 16 -> valid sublane tiling for f32 and bf16).
    tr_a = _round_up(max(1, _cdiv(rows_a, _NUM_SPLITS * grid_k)), 16)
    tr_b = _round_up(max(1, _cdiv(rows_b, _NUM_SPLITS * grid_k)), 16)

    a2 = _pad_to_2d(x_hat_F, 0.0, _NUM_SPLITS * grid_k * tr_a)
    b2 = _pad_to_2d(target_F, 0.0, _NUM_SPLITS * grid_k * tr_a)
    l2 = _pad_to_2d(lik_flat, 1.0, _NUM_SPLITS * grid_k * tr_b)   # log(1) = 0

    out_shape = (
        jax.ShapeDtypeStruct((_NUM_SPLITS, 8, _LANE), jnp.float32),
        jax.ShapeDtypeStruct((_NUM_SPLITS, 8, _LANE), jnp.float32),
    )

    sq_parts, log_parts = pl.pallas_call(
        _rd_loss_kernel,
        out_shape=out_shape,
        grid_spec=pltpu.PrefetchScalarGridSpec(
            num_scalar_prefetch=0,
            grid=(_NUM_SPLITS, grid_k),
            in_specs=[
                pl.BlockSpec((tr_a, _W), lambda p, i: (p * grid_k + i, 0)),
                pl.BlockSpec((tr_a, _W), lambda p, i: (p * grid_k + i, 0)),
                pl.BlockSpec((tr_b, _W), lambda p, i: (p * grid_k + i, 0)),
            ],
            out_specs=(
                pl.BlockSpec((1, 8, _LANE), lambda p, i: (p, 0, 0)),
                pl.BlockSpec((1, 8, _LANE), lambda p, i: (p, 0, 0)),
            ),
            scratch_shapes=[
                pltpu.VMEM((tr_a, _W), jnp.float32),
                pltpu.VMEM((tr_b, _W), jnp.float32),
            ],
        ),
        compiler_params=pltpu.CompilerParams(
            dimension_semantics=("parallel", "arbitrary")),
    )(a2, b2, l2)

    sum_sq = jnp.sum(sq_parts[:, 0, 0])
    sum_log = jnp.sum(log_parts[:, 0, 0])
    return sum_sq, sum_log


# ----------------------------------------------------------------------------
# Module equivalent
# ----------------------------------------------------------------------------
class RateDistortionLoss:
    """JAX/Pallas port of the PyTorch RateDistortionLoss (forward only)."""

    def __init__(self, lmbda=100):
        self.lmbda = lmbda

    def __call__(self, output, target_F):
        # target.size() -> (num_voxels, feat_dim)
        num_voxels = target_F.shape[0]
        x_hat_F = output["x_hat_F"]

        liks = list(output["likelihoods"].values())
        if liks:
            lik_flat = jnp.concatenate(
                [jnp.ravel(l).astype(jnp.float32) for l in liks])
        else:
            lik_flat = jnp.ones((1,), jnp.float32)  # contributes log(1) = 0

        sum_sq, sum_log = fused_rd_sums(x_hat_F, target_F, lik_flat)

        n_elems = x_hat_F.shape[0] * x_hat_F.shape[1]
        mse_loss = sum_sq / jnp.float32(n_elems)
        # sum_k log(lik_k).sum() / (-log(2) * num_voxels)
        bpp_loss = sum_log / jnp.float32(-math.log(2) * num_voxels)
        loss = self.lmbda * mse_loss + bpp_loss
        return {"mse_loss": mse_loss, "bpp_loss": bpp_loss, "loss": loss}


# ----------------------------------------------------------------------------
# Demo / self-check
# ----------------------------------------------------------------------------
if __name__ == "__main__":
    key = jax.random.PRNGKey(0)
    k1, k2, k3, k4 = jax.random.split(key, 4)

    num_voxels, feat_dim = 256, 8

    target_F = jax.random.uniform(k1, (num_voxels, feat_dim), dtype=jnp.float32)
    x_hat_F = target_F + 0.05 * jax.random.normal(k2, (num_voxels, feat_dim),
                                                  dtype=jnp.float32)
    # Likelihoods in (0, 1] (two entropy-bottleneck outputs, e.g. "y" and "z").
    lik_y = jax.random.uniform(k3, (256, 32), dtype=jnp.float32,
                               minval=0.01, maxval=1.0)
    lik_z = jax.random.uniform(k4, (128, 8), dtype=jnp.float32,
                               minval=0.01, maxval=1.0)

    output = {"x_hat_F": x_hat_F, "likelihoods": {"y": lik_y, "z": lik_z}}

    criterion = RateDistortionLoss(lmbda=100)
    out = criterion(output, target_F)
    out = jax.tree_util.tree_map(jax.block_until_ready, out)

    # Reference (plain JAX) to verify semantics.
    ref_mse = jnp.mean((x_hat_F - target_F) ** 2)
    ref_bpp = (jnp.sum(jnp.log(lik_y)) + jnp.sum(jnp.log(lik_z))) / (
        -math.log(2) * num_voxels)
    ref_loss = 100 * ref_mse + ref_bpp

    assert jnp.allclose(out["mse_loss"], ref_mse, rtol=1e-5, atol=1e-6), \
        (out["mse_loss"], ref_mse)
    assert jnp.allclose(out["bpp_loss"], ref_bpp, rtol=1e-5, atol=1e-4), \
        (out["bpp_loss"], ref_bpp)
    assert jnp.allclose(out["loss"], ref_loss, rtol=1e-5, atol=1e-4), \
        (out["loss"], ref_loss)

    print("KERNEL_OK")
</pallas_src>

<mosaic_0001>
module attributes {stable_mosaic.version = 11 : i64} {
  func.func @_rd_loss_kernel(%arg0: i32, %arg1: i32, %arg2: memref<16x512xf32, #tpu.memory_space<vmem>>, %arg3: memref<16x512xf32, #tpu.memory_space<vmem>>, %arg4: memref<16x512xf32, #tpu.memory_space<vmem>>, %arg5: memref<1x8x128xf32, #tpu.memory_space<vmem>>, %arg6: memref<1x8x128xf32, #tpu.memory_space<vmem>>, %arg7: memref<16x512xf32, #tpu.memory_space<vmem>>, %arg8: memref<16x512xf32, #tpu.memory_space<vmem>>) attributes {dimension_semantics = [#tpu.dimension_semantics<parallel>, #tpu.dimension_semantics<arbitrary>], iteration_bounds = array<i64: 2, 1>, scalar_prefetch = 0 : i64, scratch_operands = 2 : i64, tpu.core_type = #tpu.core_type<tc>, window_params = [{transform_indices = @transform_0, window_bounds = array<i64: 16, 512>}, {transform_indices = @transform_1, window_bounds = array<i64: 16, 512>}, {transform_indices = @transform_2, window_bounds = array<i64: 16, 512>}, {transform_indices = @transform_3, window_bounds = array<i64: 1, 8, 128>}, {transform_indices = @transform_4, window_bounds = array<i64: 1, 8, 128>}]} {
    %c0_i32 = arith.constant 0 : i32
    %0 = arith.cmpi eq, %arg1, %c0_i32 : i32
    %1 = arith.extui %0 : i1 to i32
    %c0_i32_0 = arith.constant 0 : i32
    %2 = arith.cmpi ne, %1, %c0_i32_0 : i32
    scf.if %2 {
      %cst = arith.constant 0.000000e+00 : f32
      %18 = vector.broadcast %cst : f32 to vector<16x512xf32>
      %c0_16 = arith.constant 0 : index
      %c0_17 = arith.constant 0 : index
      %19 = vector.load %arg7[%c0_16, %c0_17] : memref<16x512xf32, #tpu.memory_space<vmem>>, vector<16x512xf32>
      tpu.vector_store %arg7[%c0_16, %c0_17], %18 {strides = array<i32>} : memref<16x512xf32, #tpu.memory_space<vmem>>, vector<16x512xf32>,
      %cst_18 = arith.constant 0.000000e+00 : f32
      %20 = vector.broadcast %cst_18 : f32 to vector<16x512xf32>
      %c0_19 = arith.constant 0 : index
      %c0_20 = arith.constant 0 : index
      %21 = vector.load %arg8[%c0_19, %c0_20] : memref<16x512xf32, #tpu.memory_space<vmem>>, vector<16x512xf32>
      tpu.vector_store %arg8[%c0_19, %c0_20], %20 {strides = array<i32>} : memref<16x512xf32, #tpu.memory_space<vmem>>, vector<16x512xf32>,
    } else {
    }
    %c0 = arith.constant 0 : index
    %c0_1 = arith.constant 0 : index
    %3 = vector.load %arg2[%c0, %c0_1] : memref<16x512xf32, #tpu.memory_space<vmem>>, vector<16x512xf32>
    %c0_2 = arith.constant 0 : index
    %c0_3 = arith.constant 0 : index
    %4 = vector.load %arg3[%c0_2, %c0_3] : memref<16x512xf32, #tpu.memory_space<vmem>>, vector<16x512xf32>
    %5 = arith.subf %3, %4 : vector<16x512xf32>
    %c0_4 = arith.constant 0 : index
    %c0_5 = arith.constant 0 : index
    %6 = vector.load %arg7[%c0_4, %c0_5] : memref<16x512xf32, #tpu.memory_space<vmem>>, vector<16x512xf32>
    %7 = arith.mulf %5, %5 : vector<16x512xf32>
    %8 = arith.addf %6, %7 : vector<16x512xf32>
    %c0_6 = arith.constant 0 : index
    %c0_7 = arith.constant 0 : index
    %9 = vector.load %arg7[%c0_6, %c0_7] : memref<16x512xf32, #tpu.memory_space<vmem>>, vector<16x512xf32>
    tpu.vector_store %arg7[%c0_6, %c0_7], %8 {strides = array<i32>} : memref<16x512xf32, #tpu.memory_space<vmem>>, vector<16x512xf32>,
    %c0_8 = arith.constant 0 : index
    %c0_9 = arith.constant 0 : index
    %10 = vector.load %arg8[%c0_8, %c0_9] : memref<16x512xf32, #tpu.memory_space<vmem>>, vector<16x512xf32>
    %c0_10 = arith.constant 0 : index
    %c0_11 = arith.constant 0 : index
    %11 = vector.load %arg4[%c0_10, %c0_11] : memref<16x512xf32, #tpu.memory_space<vmem>>, vector<16x512xf32>
    %12 = math.log %11 : vector<16x512xf32>
    %13 = arith.addf %10, %12 : vector<16x512xf32>
    %c0_12 = arith.constant 0 : index
    %c0_13 = arith.constant 0 : index
    %14 = vector.load %arg8[%c0_12, %c0_13] : memref<16x512xf32, #tpu.memory_space<vmem>>, vector<16x512xf32>
    tpu.vector_store %arg8[%c0_12, %c0_13], %13 {strides = array<i32>} : memref<16x512xf32, #tpu.memory_space<vmem>>, vector<16x512xf32>,
    %c0_i32_14 = arith.constant 0 : i32
    %15 = arith.cmpi eq, %arg1, %c0_i32_14 : i32
    %16 = arith.extui %15 : i1 to i32
    %c0_i32_15 = arith.constant 0 : i32
    %17 = arith.cmpi ne, %16, %c0_i32_15 : i32
    scf.if %17 {
      %c0_16 = arith.constant 0 : index
      %c0_17 = arith.constant 0 : index
      %18 = vector.load %arg7[%c0_16, %c0_17] : memref<16x512xf32, #tpu.memory_space<vmem>>, vector<16x512xf32>
      %19 = vector.shape_cast %18 : vector<16x512xf32> to vector<1x16x512xf32>
      %cst = arith.constant dense<0.000000e+00> : vector<1xf32>
      %20 = vector.multi_reduction <add>, %19, %cst [1, 2] : vector<1x16x512xf32> to vector<1xf32>
      %21 = vector.shape_cast %20 : vector<1xf32> to vector<1x1x1xf32>
      %22 = vector.extract %21[0, 0, 0] : f32 from vector<1x1x1xf32>
      %23 = vector.broadcast %22 : f32 to vector<1x8x128xf32>
      %c0_18 = arith.constant 0 : index
      %c0_19 = arith.constant 0 : index
      %c0_20 = arith.constant 0 : index
      %24 = vector.load %arg5[%c0_18, %c0_19, %c0_20] : memref<1x8x128xf32, #tpu.memory_space<vmem>>, vector<1x8x128xf32>
      tpu.vector_store %arg5[%c0_18, %c0_19, %c0_20], %23 {strides = array<i32>} : memref<1x8x128xf32, #tpu.memory_space<vmem>>, vector<1x8x128xf32>,
      %c0_21 = arith.constant 0 : index
      %c0_22 = arith.constant 0 : index
      %25 = vector.load %arg8[%c0_21, %c0_22] : memref<16x512xf32, #tpu.memory_space<vmem>>, vector<16x512xf32>
      %26 = vector.shape_cast %25 : vector<16x512xf32> to vector<1x16x512xf32>
      %cst_23 = arith.constant dense<0.000000e+00> : vector<1xf32>
      %27 = vector.multi_reduction <add>, %26, %cst_23 [1, 2] : vector<1x16x512xf32> to vector<1xf32>
      %28 = vector.shape_cast %27 : vector<1xf32> to vector<1x1x1xf32>
      %29 = vector.extract %28[0, 0, 0] : f32 from vector<1x1x1xf32>
      %30 = vector.broadcast %29 : f32 to vector<1x8x128xf32>
      %c0_24 = arith.constant 0 : index
      %c0_25 = arith.constant 0 : index
      %c0_26 = arith.constant 0 : index
      %31 = vector.load %arg6[%c0_24, %c0_25, %c0_26] : memref<1x8x128xf32, #tpu.memory_space<vmem>>, vector<1x8x128xf32>
      tpu.vector_store %arg6[%c0_24, %c0_25, %c0_26], %30 {strides = array<i32>} : memref<1x8x128xf32, #tpu.memory_space<vmem>>, vector<1x8x128xf32>,
    } else {
    }
    return
  }
  func.func @transform_0(%arg0: i32, %arg1: i32) -> (i32, i32) {
    %c1_i32 = arith.constant 1 : i32
    %0 = arith.muli %arg0, %c1_i32 : i32
    %1 = arith.addi %0, %arg1 : i32
    %c0_i32 = arith.constant 0 : i32
    %c0_i32_0 = arith.constant 0 : i32
    return %1, %c0_i32 : i32, i32
  }
  func.func @transform_1(%arg0: i32, %arg1: i32) -> (i32, i32) {
    %c1_i32 = arith.constant 1 : i32
    %0 = arith.muli %arg0, %c1_i32 : i32
    %1 = arith.addi %0, %arg1 : i32
    %c0_i32 = arith.constant 0 : i32
    %c0_i32_0 = arith.constant 0 : i32
    return %1, %c0_i32 : i32, i32
  }
  func.func @transform_2(%arg0: i32, %arg1: i32) -> (i32, i32) {
    %c1_i32 = arith.constant 1 : i32
    %0 = arith.muli %arg0, %c1_i32 : i32
    %1 = arith.addi %0, %arg1 : i32
    %c0_i32 = arith.constant 0 : i32
    %c0_i32_0 = arith.constant 0 : i32
    return %1, %c0_i32 : i32, i32
  }
  func.func @transform_3(%arg0: i32, %arg1: i32) -> (i32, i32, i32) {
    %c0_i32 = arith.constant 0 : i32
    %c0_i32_0 = arith.constant 0 : i32
    %c0_i32_1 = arith.constant 0 : i32
    return %arg0, %c0_i32, %c0_i32_0 : i32, i32, i32
  }
  func.func @transform_4(%arg0: i32, %arg1: i32) -> (i32, i32, i32) {
    %c0_i32 = arith.constant 0 : i32
    %c0_i32_0 = arith.constant 0 : i32
    %c0_i32_1 = arith.constant 0 : i32
    return %arg0, %c0_i32, %c0_i32_0 : i32, i32, i32
  }
}

</mosaic_0001>

<bundles_post_ra>
// kernel: tpu_custom_call.1
= control target key start
LH: loop header
LB: loop body
LE: loop exit
PB: predicated region body
PF: predicated region fallthrough
CT: control target
= control target key end

     0   :  { %s1410_s0 = inlined_call_operand.hbm [shape: f32[32,512], index: 0, kind: input, shape index: {}]   ;;  %s1411_s1 = inlined_call_operand.hbm [shape: f32[32,512], index: 1, kind: input, shape index: {}]   ;;  %s1412_s2 = inlined_call_operand.hbm [shape: f32[32,512], index: 2, kind: input, shape index: {}]   ;;  %s1413_s3 = inlined_call_operand.hbm [shape: f32[2,8,128], index: 3, kind: output, shape index: {0}]   ;;  %s1414_s4 = inlined_call_operand.hbm [shape: f32[2,8,128], index: 4, kind: output, shape index: {1}]  }
   0x1   :  { %1426 = sst [smem:[#allocation21_spill]] %s1411_s1 }
   0x2   :  { %10 = vsyncpa [#allocation5], 0 }
   0x3   :  { %12 = vsyncpa [#allocation5 + $0x1], 0 }
   0x4   :  { %13 = vsyncpa [#allocation8], 0 }
   0x5   :  { %15 = vsyncpa [#allocation8 + $0x1], 0 }
   0x6   :  { %16 = vsyncpa [#allocation6], 0 }
   0x7   :  { %18 = vsyncpa [#allocation6 + $0x1], 0 }
   0x8   :  { %19 = vsyncpa [#allocation12], 0 }
   0x9   :  { %21 = vsyncpa [#allocation12 + $0x1], 0  ;;  %s1076_s15 = smov 0   ;;  %s1078_s16 = smov 0  }
   0xa   :  { %s1080_s17 = smov 0   ;;  %s1082_s18 = smov 0  }
   0xb   :  { %s1084_s19 = smov 0   ;;  %s1086_s20 = smov 0  }
   0xc LB: > { %1427 = sst [smem:[#allocation17_spill]] %s1038_s19  ;;  %s1107_s21 = sadd.s32 4294967295, %s1042_s20   ;;  %s1042_s20 = sphi %s1086_s20, %s27_s20   ;;  %s1038_s19 = sphi %s1084_s19, %s1452_s19   ;;  %s1034_s18 = sphi %s1082_s18, %s1451_s18   ;;  %s1030_s17 = sphi %s1080_s17, %s1455_s17   ;;  %s1026_s16 = sphi %s1078_s16, %s1454_s16   ;;  %s1022_s15 = sphi %s1076_s15, %s1453_s15  }
   0xd   : > { %1428 = sst [smem:[#allocation18_spill]] %s1042_s20  ;;  %s702_s22 = sadd.s32 4294967294, %s1042_s20  }
   0xe   : > { %s39_s23 = sadd.s32 1, %s1038_s19  ;;  %s48_s24 = sadd.s32 1, %s1030_s17 }
   0xf   : > { %p41_p0 = scmp.ge.s32.totalorder %s39_s23, 2  ;;  %p55_p1 = scmp.ne.s32.totalorder %s1030_s17, %s1026_s16 }
  0x10   : > { %p56_p2 = scmp.eq.s32.totalorder %s1042_s20, 0  ;;  %p61_p3 = scmp.ne.s32.totalorder %s1026_s16, %s1022_s15 }
  0x11   : > { %s1457_s23 = smov (%p41_p0, %s39_s23), 0  ;;  %p62_p5 = scmp.eq.s32.totalorder %s1107_s21, 0 }
  0x12   : > { %1429 = sst [smem:[#allocation19_spill]] %s1457_s23  ;;  %p1119_p4 = por %p56_p2, %p55_p1 }
  0x13   : > { %s45_s26 = ssub.s32 %s1038_s19, %s1457_s23  ;;  %p141_p6 = scmp.eq.s32.totalorder %s1107_s21, 1 }
  0x14   : > { %p46_p7 = scmp.eq.s32.totalorder %s45_s26, 0  ;;  %p1127_p8 = por %p62_p5, %p61_p3 }
  0x15   : > { %p1131_p9 = por %p141_p6, %p55_p1  ;;  %p147_p10 = scmp.eq.s32.totalorder %s702_s22, 1 }
  0x16   : > { %s1431_s27 = scalar_select %p1127_p8, 1, 0 }
  0x17   : > { %s1432_s28 = scalar_select %p1131_p9, 1, 0 }
  0x18   : > { %s1136_s29 = scalar_select %p46_p7, %s1030_s17, %s48_s24  }
  0x19   : > { %p1138_p11 = por %p147_p10, %p61_p3  ;;  %p766_p13 = scmp.lt.s32.totalorder %s1042_s20, 2 }
  0x1a   : > { %1433 = sst [smem:[#allocation20_spill]] %s1136_s29  ;;  %s1415_s5 = sand.u32 1, %s1030_s17  }
  0x1b   : > { %s1434_s30 = scalar_select %p1138_p11, 1, 0 }
  0x1c   : > { %s1147_s6 = sshll.u32 %s1415_s5, 6  ;;  %s1150_s7 = sshll.u32 %s1038_s19, 10 }
  0x1d   : > { %p1154_p0 = pnand %p766_p13, %p1119_p4  ;;  %s216_s9 = sand.u32 1, %s1042_s20  }
  0x1e   : > { %s1436_s1 = sld [smem:[#allocation21_spill]]  ;;  %s220_s13 = scalar_lea.vmem [#allocation7], %s1147_s6 }
  0x1f   : > { %s229_s14 = sshll.u32 %s220_s13, 4  ;;  %s1170_s22 = scalar_lea.sflag [#allocation8], %s216_s9  ;;  %s1167_s14 = int_to_ptr.vmem [resolvable:$true] %s229_s14 }
  0x20   : > { %p1176_p4 = pneg %p1154_p0 }
  0x24   : > { %s1163_s12 = scalar_lea.hbm %s1436_s1, %s1150_s7  ;;  %s839_s11 = scalar_lea.hbm %s1436_s1, 2048 }
  0x25   : > { %s834_s24 = scalar_lea.hbm %s1163_s12, 1024  ;;  %p840_p7 = scmp.lt.u32.totalorder %s1163_s12, %s1436_s1 }
  0x26   : > { %p835_p3 = scmp.ne.s32.totalorder %s1163_s12, %s834_s24  ;;  %p841_p10 = scmp.lt.u32.totalorder %s839_s11, %s834_s24 }
  0x27   : > { %p843_p12 = scmp.lt.u32.totalorder %s834_s24, %s1163_s12 }
  0x28   : > { %p837_p5 = pnand %p1176_p4, %p835_p3  ;;  %p842_p13 = por %p841_p10, %p840_p7 }
  0x2a   : > { %p838_p6 = pneg %p837_p5  ;;  %p844_p1 = por %p843_p12, %p842_p13 }
  0x2c   : > { %p845_p2 = pnand %p844_p1, %p838_p6 }
  0x2e   : > { %848 = shalt.err (!%p845_p2)
}
  0x2f   : > { %s849_s9 = scalar_lea.vmem %s1167_s14, 1024  ;;  %s1044_s26 = smov [#allocation7]  }
  0x30   : > { %p850_p3 = scmp.ne.s32.totalorder %s1167_s14, %s849_s9  ;;  %s854_s10 = sshll.u32 %s1044_s26, 4  ;;  %s855_s10 = int_to_ptr.vmem [resolvable:$false] %s854_s10 }
  0x31   : > { %s856_s5 = scalar_lea.vmem %s855_s10, 2048  ;;  %p857_p9 = scmp.lt.s32.totalorder %s1167_s14, %s855_s10 }
  0x32   : > { %p852_p5 = pnand %p850_p3, %p1176_p4  ;;  %p858_p8 = scmp.lt.s32.totalorder %s856_s5, %s849_s9 }
  0x34   : > { %p853_p11 = pneg %p852_p5  ;;  %p859_p7 = por %p858_p8, %p857_p9 }
  0x36   : > { %p860_p10 = pnand %p859_p7, %p853_p11 }
  0x38   : > { %863 = shalt.err (!%p860_p10)
}
  0x39   : > { %s1418_s24 = smov 512   ;;  %s1420_s11 = smov 32  }
  0x3a   : > { %755 = dma.hbm_to_vmem [thread:$0]  (!%p1154_p0), %s1163_s12, 1024, %s1167_s14, %s1170_s22, %s1418_s24, %s1418_s24, %s1420_s11  }
  0x3b   : > { %p1438_p8 = scmp.lt.s32.totalorder %s1042_s20, 3  ;;  %p1439_p9 = scmp.ge.s32.totalorder %s1042_s20, 1 }
  0x3c   : > { %s1215_s10 = scalar_lea.hbm %s1410_s0, %s1150_s7  ;;  %s197_s5 = scalar_lea.vmem [#allocation4], %s1147_s6 }
  0x3d   : > { %p1207_p11 = pnand %p1439_p9, %p1438_p8  ;;  %s206_s1 = sshll.u32 %s197_s5, 4  ;;  %s1218_s1 = int_to_ptr.vmem [resolvable:$true] %s206_s1 }
  0x3e   : > { %s1224_s24 = scalar_lea.hbm %s1412_s2, %s1150_s7  ;;  %s1441_s11 = sand.u32 1, %s1030_s17  }
  0x3f   : > { %s1440_s13 = scalar_select %p1207_p11, 1, 0 }
  0x40   : > { %s1228_s23 = scalar_lea.sflag [#allocation5], %s1441_s11  ;;  %s864_s19 = scalar_lea.hbm %s1215_s10, 1024 }
  0x41   : > { %p865_p12 = scmp.ne.s32.totalorder %s1215_s10, %s864_s19  ;;  %s869_s29 = scalar_lea.hbm %s1410_s0, 2048 }
  0x42   : > { %p870_p6 = scmp.lt.u32.totalorder %s1215_s10, %s1410_s0  ;;  %p871_p13 = scmp.lt.u32.totalorder %s869_s29, %s864_s19 }
  0x43   : > { %p867_p1 = pnand %p865_p12, %p1176_p4  ;;  %p873_p5 = scmp.lt.u32.totalorder %s864_s19, %s1215_s10 }
  0x44   : > { %p872_p3 = por %p871_p13, %p870_p6 }
  0x45   : > { %p868_p2 = pneg %p867_p1 }
  0x46   : > { %p874_p7 = por %p873_p5, %p872_p3 }
  0x48   : > { %p875_p10 = pnand %p874_p7, %p868_p2 }
  0x4a   : > { %878 = shalt.err (!%p875_p10)
}
  0x4b   : > { %s879_s7 = scalar_lea.vmem %s1218_s1, 1024  ;;  %s1047_s11 = smov [#allocation4]  }
  0x4c   : > { %p880_p8 = scmp.ne.s32.totalorder %s1218_s1, %s879_s7  ;;  %s884_s12 = sshll.u32 %s1047_s11, 4  ;;  %s885_s12 = int_to_ptr.vmem [resolvable:$false] %s884_s12 }
  0x4d   : > { %s886_s20 = scalar_lea.vmem %s885_s12, 2048  ;;  %p887_p1 = scmp.lt.s32.totalorder %s1218_s1, %s885_s12 }
  0x4e   : > { %p882_p9 = pnand %p880_p8, %p1176_p4  ;;  %p888_p11 = scmp.lt.s32.totalorder %s886_s20, %s879_s7 }
  0x50   : > { %p883_p12 = pneg %p882_p9  ;;  %p889_p6 = por %p888_p11, %p887_p1 }
  0x52   : > { %p890_p13 = pnand %p889_p6, %p883_p12 }
  0x54   : > { %893 = shalt.err (!%p890_p13)
}
  0x55   : > { %s1442_s19 = smov 32   ;;  %s1443_s29 = smov 512  }
  0x56   : > { %752 = dma.hbm_to_vmem [thread:$0]  (!%p1154_p0), %s1215_s10, 1024, %s1218_s1, %s1228_s23, %s1443_s29, %s1443_s29, %s1442_s19  }
  0x57   : > { %s243_s14 = scalar_lea.vmem [#allocation9], %s1147_s6  ;;  %s894_s26 = scalar_lea.hbm %s1224_s24, 1024 }
  0x58   : > { %s252_s9 = sshll.u32 %s243_s14, 4  ;;  %p895_p11 = scmp.ne.s32.totalorder %s1224_s24, %s894_s26  ;;  %s1256_s9 = int_to_ptr.vmem [resolvable:$true] %s252_s9 }
  0x59   : > { %s899_s11 = scalar_lea.hbm %s1412_s2, 2048  ;;  %p900_p5 = scmp.lt.u32.totalorder %s1224_s24, %s1412_s2 }
  0x5a   : > { %p897_p2 = pnand %p895_p11, %p1176_p4  ;;  %p901_p7 = scmp.lt.u32.totalorder %s899_s11, %s894_s26 }
  0x5b   : > { %p903_p8 = scmp.lt.u32.totalorder %s894_s26, %s1224_s24 }
  0x5c   : > { %p898_p3 = pneg %p897_p2  ;;  %p902_p10 = por %p901_p7, %p900_p5 }
  0x5e   : > { %p904_p9 = por %p903_p8, %p902_p10 }
  0x60   : > { %p905_p12 = pnand %p904_p9, %p898_p3 }
  0x62   : > { %908 = shalt.err (!%p905_p12)
}
  0x63   : > { %s909_s1 = scalar_lea.vmem %s1256_s9, 1024  ;;  %s1048_s23 = smov [#allocation9]  }
  0x64   : > { %p910_p1 = scmp.ne.s32.totalorder %s1256_s9, %s909_s1  ;;  %s914_s6 = sshll.u32 %s1048_s23, 4  ;;  %s915_s6 = int_to_ptr.vmem [resolvable:$false] %s914_s6 }
  0x65   : > { %s916_s10 = scalar_lea.vmem %s915_s6, 2048  ;;  %p917_p11 = scmp.lt.s32.totalorder %s1256_s9, %s915_s6 }
  0x66   : > { %p912_p6 = pnand %p910_p1, %p1176_p4  ;;  %p918_p2 = scmp.lt.s32.totalorder %s916_s10, %s909_s1 }
  0x68   : > { %p913_p13 = pneg %p912_p6  ;;  %p919_p5 = por %p918_p2, %p917_p11 }
  0x6a   : > { %p920_p7 = pnand %p919_p5, %p913_p13 }
  0x6c   : > { %923 = shalt.err (!%p920_p7)
}
  0x6d   : > { %758 = dma.hbm_to_vmem [thread:$0]  (!%p1154_p0), %s1224_s24, 1024, %s1256_s9, %s1170_s22, %s1443_s29, %s1443_s29, %s1442_s19  }
  0x6e   : > { %p1444_p4 = scmp.ne.s32.totalorder %s1440_s13, 0 }
  0x6f   : > { %s1286_s25 = sand.u32 (!%p1444_p4), 1, %s1026_s16   ;;  %p1445_p3 = scmp.ne.s32.totalorder (!%p1444_p4), %s1431_s27, 0 }
  0x70   : > { %264 = sbr.rel (%p1444_p4) target bundleno = 388 (0x184), region = 32  ;;  %s718_s14 = sshll.u32 (!%p1444_p4), %s1286_s25, 6 }
  0x71   : > { %s267_s26 = scalar_lea.sflag (!%p1444_p4), [#allocation5], %s1286_s25  ;;  %s1290_s5 = scalar_lea.vmem (!%p1444_p4), [#allocation4], %s718_s14 }
  0x77   : > { %1005 = dma.done.wait (%p1445_p3), %s267_s26, 1024  }
  0x78   : > { %1007 = vsyncadd (%p1445_p3), %s267_s26, 4294966272  ;;  %s275_s8 = sand.u32 1, %s1107_s21   ;;  %s1297_s24 = scalar_lea.vmem [#allocation7], %s718_s14 }
  0x79   : > { %s276_s22 = scalar_lea.sflag [#allocation8], %s275_s8 }
  0x7a   : > { %1009 = dma.done.wait (%p1445_p3), %s276_s22, 2048  }
  0x7b   : > { %1011 = vsyncadd (%p1445_p3), %s276_s22, 4294965248  ;;  %v354_v0 = vld [vmem:[%s1290_s5] sm:$0xff]  ;;  %v355_v1 = vld [vmem:[%s1290_s5 + $0x8] sm:$0xff]  ;;  %s288_s21 = scalar_lea.vmem [#allocation9], %s718_s14  ;;  %s721_s27 = sshll.u32 %s1286_s25, 3 }
  0x7c   : > { %v356_v2 = vld [vmem:[%s1290_s5 + $0x10] sm:$0xff]  ;;  %v357_v3 = vld [vmem:[%s1290_s5 + $0x18] sm:$0xff]  ;;  %v358_v4 = vld [vmem:[%s1290_s5 + $0x20] sm:$0xff]  ;;  %s725_s13 = sshll.u32 %s1034_s18, 7  ;;  %s320_s19 = scalar_lea.vmem [#allocation10], %s721_s27 }
  0x7d   : > { %v362_v5 = vld [vmem:[%s1297_s24] sm:$0xff]  ;;  %v363_v6 = vld [vmem:[%s1297_s24 + $0x8] sm:$0xff]  ;;  %v364_v7 = vld [vmem:[%s1297_s24 + $0x10] sm:$0xff]  ;;  %s532_s29 = sshll.u32 %s320_s19, 4  ;;  %s1328_s11 = scalar_lea.hbm %s1413_s3, %s725_s13  ;;  %s1330_s29 = int_to_ptr.vmem [resolvable:$true] %s532_s29 }
  0x7e   : > { %v365_v8 = vld [vmem:[%s1297_s24 + $0x18] sm:$0xff]  ;;  %v370_v9 = vsub.f32 %v354_v0, %v362_v5  ;;  %v359_v10 = vld [vmem:[%s1290_s5 + $0x28] sm:$0xff]  ;;  %v366_v11 = vld [vmem:[%s1297_s24 + $0x20] sm:$0xff]  ;;  %v371_v12 = vsub.f32 %v355_v1, %v363_v6  ;;  %v372_v13 = vsub.f32 %v356_v2, %v364_v7  ;;  %s514_s20 = scalar_lea.sflag [#allocation6], %s1286_s25  ;;  %s924_s1 = scalar_lea.vmem %s1330_s29, 128 }
  0x7f   : > { %v373_v14 = vsub.f32 %v357_v3, %v365_v8  ;;  %v367_v15 = vld [vmem:[%s1297_s24 + $0x28] sm:$0xff]  ;;  %v418_v17 = vld [vmem:[%s288_s21] sm:$0xff]  ;;  %v374_v19 = vsub.f32 %v358_v4, %v366_v11  ;;  %v420_v22 = vld [vmem:[%s288_s21 + $0x10] sm:$0xff]  ;;  %p925_p0 = scmp.ne.s32.totalorder %s1330_s29, %s924_s1  ;;  %p1446_p10 = scmp.ne.s32.totalorder %s1432_s28, 0 }
  0x80   : > { %v386_v16 = vmul.f32 %v370_v9, %v370_v9  ;;  %v419_v18 = vld [vmem:[%s288_s21 + $0x8] sm:$0xff]  ;;  %v387_v20 = vmul.f32 %v371_v12, %v371_v12  ;;  %v388_v21 = vmul.f32 %v372_v13, %v372_v13  ;;  %v360_v23 = vld [vmem:[%s1290_s5 + $0x30] sm:$0xff]  ;;  %v421_v25 = vld [vmem:[%s288_s21 + $0x18] sm:$0xff]  ;;  %818 = vlog2.f32 %v418_v17  ;;  %s1049_s23 = smov [#allocation10]  }
  0x81   : > { %v368_v24 = vld [vmem:[%s1297_s24 + $0x30] sm:$0xff]  ;;  %v375_v26 = vsub.f32 %v359_v10, %v367_v15  ;;  %v389_v27 = vmul.f32 %v373_v14, %v373_v14  ;;  %v422_v29 = vld [vmem:[%s288_s21 + $0x20] sm:$0xff]  ;;  %820 = vlog2.f32 %v419_v18  ;;  %v361_v30 = vld [vmem:[%s1290_s5 + $0x38] sm:$0xff]  ;;  %v390_v34 = vmul.f32 %v374_v19, %v374_v19  ;;  %p926_p8 = pnand %p925_p0, %p1446_p10  ;;  %s928_s6 = sshll.u32 %s1049_s23, 4  ;;  %s929_s6 = int_to_ptr.vmem [resolvable:$false] %s928_s6 }
  0x82   : > { %v469_v28 = vadd.f32 %v387_v20, %v386_v16  ;;  %v369_v31 = vld [vmem:[%s1297_s24 + $0x38] sm:$0xff]  ;;  %v423_v32 = vld [vmem:[%s288_s21 + $0x28] sm:$0xff]  ;;  %822 = vlog2.f32 %v420_v22  ;;  %v376_v33 = vsub.f32 %v360_v23, %v368_v24  ;;  %v424_v36 = vld [vmem:[%s288_s21 + $0x30] sm:$0xff]  ;;  %s930_s10 = scalar_lea.vmem %s929_s6, 256  ;;  %p931_p12 = scmp.lt.s32.totalorder %s1330_s29, %s929_s6 }
  0x83   : > { %824 = vlog2.f32 %v421_v25  ;;  %v377_v37 = vsub.f32 %v361_v30, %v369_v31  ;;  %v391_v38 = vmul.f32 %v375_v26, %v375_v26  ;;  %v425_v40 = vld [vmem:[%s288_s21 + $0x38] sm:$0xff]  ;;  %p927_p9 = pneg %p926_p8  ;;  %p932_p1 = scmp.lt.s32.totalorder %s930_s10, %s924_s1 }
  0x84   : > { %v470_v35 = vadd.f32 %v469_v28, %v388_v21  ;;  %826 = vlog2.f32 %v422_v29  ;;  %v392_v41 = vmul.f32 %v376_v33, %v376_v33 }
  0x85   : > { %828 = vlog2.f32 %v423_v32  ;;  %v393_v43 = vmul.f32 %v377_v37, %v377_v37  ;;  %p933_p6 = por %p932_p1, %p931_p12 }
  0x86   : > { %v471_v39 = vadd.f32 %v470_v35, %v389_v27  ;;  %830 = vlog2.f32 %v424_v36 }
  0x87   : > { %832 = vlog2.f32 %v425_v40  ;;  %p934_p13 = pnand %p933_p6, %p927_p9 }
  0x88   : > { %v472_v42 = vadd.f32 %v471_v39, %v390_v34 }
  0x8a   : > { %v473_v44 = vadd.f32 %v472_v42, %v391_v38  ;;  %v819_v45 = vpop.eup %818 }
  0x8b   : > { %v821_v46 = vpop.eup %820  ;;  %v427_v48 = vmul.f32 0.6931472, %v819_v45 }
  0x8c   : > { %v474_v47 = vadd.f32 %v473_v44, %v392_v41  ;;  %v823_v49 = vpop.eup %822  ;;  %v429_v50 = vmul.f32 0.6931472, %v821_v46 }
  0x8d   : > { %v825_v51 = vpop.eup %824  ;;  %v431_v53 = vmul.f32 0.6931472, %v823_v49 }
  0x8e   : > { %v475_v52 = vadd.f32 %v474_v47, %v393_v43  ;;  %v827_v54 = vpop.eup %826  ;;  %v433_v55 = vmul.f32 0.6931472, %v825_v51  ;;  %v495_v56 = vadd.f32 %v429_v50, %v427_v48 }
  0x8f   : > { %v829_v57 = vpop.eup %828  ;;  %v435_v58 = vmul.f32 0.6931472, %v827_v54 }
  0x90   : > { %476 = vadd.xlane.f32.xlu0 %v475_v52  ;;  %v496_v59 = vadd.f32 %v495_v56, %v431_v53  ;;  %v831_v60 = vpop.eup %830  ;;  %v437_v61 = vmul.f32 0.6931472, %v829_v57 }
  0x91   : > { %v833_v63 = vpop.eup %832  ;;  %v439_v0 = vmul.f32 0.6931472, %v831_v60 }
  0x92   : > { %v497_v62 = vadd.f32 %v496_v59, %v433_v55  ;;  %v441_v2 = vmul.f32 0.6931472, %v833_v63 }
  0x94   : > { %v498_v1 = vadd.f32 %v497_v62, %v435_v58 }
  0x96   : > { %v499_v3 = vadd.f32 %v498_v1, %v437_v61 }
  0x98   : > { %v500_v4 = vadd.f32 %v499_v3, %v439_v0 }
  0x9a   : > { %v501_v5 = vadd.f32 %v500_v4, %v441_v2 }
  0x9c   : > { %502 = vadd.xlane.f32.xlu0 %v501_v5 }
 0x11d   : > { %v477_v6 = vpop.xlane.xlu0 %476 }
 0x11e   : > { %v478_v7 = vrot.slane %v477_v6, 4 }
 0x120   : > { %v479_v8 = vadd.f32 %v478_v7, %v477_v6 }
 0x122   : > { %v480_v9 = vrot.slane %v479_v8, 2 }
 0x124   : > { %v481_v10 = vadd.f32 %v480_v9, %v479_v8 }
 0x126   : > { %v482_v11 = vrot.slane %v481_v10, 1 }
 0x128   : > { %v483_v12 = vadd.f32 %v482_v11, %v481_v10 }
 0x129   : > { %v503_v13 = vpop.xlane.xlu0 %502 }
 0x12a   : > { %735 = vpush %v483_v12  ;;  %v504_v14 = vrot.slane %v503_v13, 4 }
 0x12c   : > { %v505_v15 = vadd.f32 %v504_v14, %v503_v13 }
 0x12e   : > { %v506_v16 = vrot.slane %v505_v15, 2 }
 0x130   : > { %v507_v17 = vadd.f32 %v506_v16, %v505_v15 }
 0x132   : > { %v508_v18 = vrot.slane %v507_v17, 1 }
 0x134   : > { %v509_v19 = vadd.f32 %v508_v18, %v507_v17 }
 0x136   : > { %737 = vpush %v509_v19 }
 0x15b   : > { %s736_s12 = spop %735 }
 0x15c   : > { %v485_v20 = vstv %s736_s12 }
 0x15d   : > { %486 = vst [vmem:[%s320_s19] sm:$0xff] %v485_v20 }
 0x15e   : > { %937 = shalt.err (!%p934_p13)
}
 0x15f   : > { %s938_s14 = scalar_lea.hbm %s1328_s11, 128  ;;  %s942_s8 = scalar_lea.hbm %s1413_s3, 256 }
 0x160   : > { %p939_p11 = scmp.ne.s32.totalorder %s1328_s11, %s938_s14  ;;  %p943_p7 = scmp.lt.u32.totalorder %s1328_s11, %s1413_s3 }
 0x161   : > { %p944_p4 = scmp.lt.u32.totalorder %s942_s8, %s938_s14  ;;  %p946_p0 = scmp.lt.u32.totalorder %s938_s14, %s1328_s11 }
 0x162   : > { %p940_p2 = pnand %p939_p11, %p1446_p10 }
 0x163   : > { %p945_p3 = por %p944_p4, %p943_p7 }
 0x164   : > { %p941_p5 = pneg %p940_p2 }
 0x165   : > { %p947_p8 = por %p946_p0, %p945_p3 }
 0x167   : > { %p948_p9 = pnand %p947_p8, %p941_p5 }
 0x169   : > { %951 = shalt.err (!%p948_p9)
}
 0x16a   : > { %745 = dma.vmem_to_hbm [thread:$0]  (%p1446_p10), %s1330_s29, 128, %s1328_s11, %s514_s20  }
 0x16b   : > { %s327_s21 = scalar_lea.vmem [#allocation11], %s721_s27  ;;  %s738_s9 = spop %737 }
 0x16c   : > { %s545_s19 = sshll.u32 %s327_s21, 4  ;;  %s1363_s1 = scalar_lea.hbm %s1414_s4, %s725_s13  ;;  %v511_v21 = vstv %s738_s9  ;;  %s1356_s19 = int_to_ptr.vmem [resolvable:$true] %s545_s19 }
 0x16d   : > { %512 = vst [vmem:[%s327_s21] sm:$0xff] %v511_v21  ;;  %s519_s23 = scalar_lea.sflag [#allocation12], %s1286_s25  ;;  %s952_s6 = scalar_lea.vmem %s1356_s19, 128 }
 0x16e   : > { %p953_p12 = scmp.ne.s32.totalorder %s1356_s19, %s952_s6  ;;  %s1050_s27 = smov [#allocation11]  }
 0x16f   : > { %s956_s29 = sshll.u32 %s1050_s27, 4  ;;  %s957_s29 = int_to_ptr.vmem [resolvable:$false] %s956_s29 }
 0x170   : > { %p954_p1 = pnand %p953_p12, %p1446_p10  ;;  %s958_s11 = scalar_lea.vmem %s957_s29, 256 }
 0x171   : > { %p959_p13 = scmp.lt.s32.totalorder %s1356_s19, %s957_s29  ;;  %p960_p11 = scmp.lt.s32.totalorder %s958_s11, %s952_s6 }
 0x172   : > { %p955_p6 = pneg %p954_p1 }
 0x173   : > { %p961_p2 = por %p960_p11, %p959_p13 }
 0x175   : > { %p962_p5 = pnand %p961_p2, %p955_p6 }
 0x177   : > { %965 = shalt.err (!%p962_p5)
}
 0x178   : > { %s966_s18 = scalar_lea.hbm %s1363_s1, 128  ;;  %s970_s20 = scalar_lea.hbm %s1414_s4, 256 }
 0x179   : > { %p967_p7 = scmp.ne.s32.totalorder %s1363_s1, %s966_s18  ;;  %p971_p0 = scmp.lt.u32.totalorder %s1363_s1, %s1414_s4 }
 0x17a   : > { %p972_p8 = scmp.lt.u32.totalorder %s970_s20, %s966_s18  ;;  %p974_p12 = scmp.lt.u32.totalorder %s966_s18, %s1363_s1 }
 0x17b   : > { %p968_p4 = pnand %p967_p7, %p1446_p10 }
 0x17c   : > { %p973_p9 = por %p972_p8, %p971_p0 }
 0x17d   : > { %p969_p3 = pneg %p968_p4 }
 0x17e   : > { %p975_p1 = por %p974_p12, %p973_p9 }
 0x180   : > { %p976_p6 = pnand %p975_p1, %p969_p3 }
 0x182   : > { %979 = shalt.err (!%p976_p6)
}
 0x183   : > { %746 = dma.vmem_to_hbm [thread:$0]  (%p1446_p10), %s1356_s19, 128, %s1363_s1, %s519_s23  }
 0x184 PF: > { %s1447_s26 = sld [smem:[#allocation18_spill]]  ;;  %s557_s5 = sand.u32 1, %s1022_s15  }
 0x185   : > { %p1448_p13 = scmp.ne.s32.totalorder %s1434_s30, 0  ;;  %s558_s8 = scalar_lea.sflag [#allocation6], %s557_s5 }
 0x18a   : > { %p1449_p11 = scmp.ge.s32.totalorder %s1447_s26, 2 }
 0x18c   : > { %p760_p2 = pnand %p1449_p11, %p1448_p13 }
 0x18e   : > { %1013 = dma.done.wait (!%p760_p2), %s558_s8, 128  }
 0x18f   : > { %1015 = vsyncadd (!%p760_p2), %s558_s8, 4294967168  ;;  %s567_s22 = scalar_lea.sflag [#allocation12], %s557_s5 }
 0x190   : > { %1017 = dma.done.wait (!%p760_p2), %s567_s22, 128  }
 0x191   : > { %1019 = vsyncadd (!%p760_p2), %s567_s22, 4294967168  ;;  %s27_s20 = sadd.s32 1, %s1447_s26   ;;  %s1450_s28 = sld [smem:[#allocation20_spill]] }
 0x192   : > { %p24_p5 = scmp.ge.s32.totalorder %s27_s20, 4   ;;  %s1451_s18 = sld [smem:[#allocation17_spill]] }
 0x193   : > { %s1452_s19 = sld [smem:[#allocation19_spill]]  ;;  %s1453_s15 = smov %s1026_s16 }
 0x194   : > { %s1454_s16 = smov %s1030_s17  ;;  %26 = sbr.rel (!%p24_p5) target bundleno = 12 (0xc), region = 126 }
 0x197   : > { %s1455_s17 = smov %s1450_s28 }
 0x19b   :  { %572 = vsyncpa [#allocation5], 1 }
 0x19c   :  { %574 = vsyncpa [#allocation5 + $0x1], 1 }
 0x19d   :  { %575 = vsyncpa [#allocation8], 1 }
 0x19e   :  { %577 = vsyncpa [#allocation8 + $0x1], 1 }
 0x19f   :  { %578 = vsyncpa [#allocation6], 1 }
 0x1a0   :  { %580 = vsyncpa [#allocation6 + $0x1], 1 }
 0x1a1   :  { %581 = vsyncpa [#allocation12], 1 }
 0x1a2   :  { %583 = vsyncpa [#allocation12 + $0x1], 1 }

</bundles_post_ra>
